<compile_context>
chip_gen: v5e
topology: v5e:2x2
jax: 0.10.0
libtpu: 0.0.40
codegen_flags: <defaults>
</compile_context>

<pallas_src>
import jax
import jax.numpy as jnp
from jax.experimental import pallas as pl
from jax.experimental.pallas import tpu as pltpu


def learnable_bias_kernel(x_ref, b_ref, o_ref):
    # x_ref: (t_row, t_lane) tile; row = one (image, channel) pair, lane = pixels.
    # b_ref: (t_row, 1) per-row bias, broadcast across lanes by the VPU.
    o_ref[...] = x_ref[...] + b_ref[...]


def _round_up(n: int, unit: int) -> int:
    return ((n + unit - 1) // unit) * unit


def learnable_bias_forward(x_nchw, bias):
    """x_nchw: (B, C, H, W); bias: (1, C, 1, 1) (or anything reshapeable to (C,)).
    Returns x + bias broadcast over (B, C, H, W)."""
    B, C, H, W = x_nchw.shape
    HW = H * W
    R = B * C
    dtype = x_nchw.dtype
    itemsize = jnp.dtype(dtype).itemsize

    # Free reshape (contiguous); bias -> per-row column (row i gets bias[i % C]).
    x2 = x_nchw.reshape(R, HW)
    b_col = bias.reshape(C, 1).astype(dtype)
    b2 = jnp.tile(b_col, (B, 1))  # (R, 1); tiny, fuses under jit.

    # dtype-aware native sublane tile: 8 (f32) / 16 (bf16) / 32 (int8, fp8).
    row_unit = max(8, 32 // itemsize)

    # Target ~4 MiB per x block (measured ~86% of HBM roofline); lane tile is
    # a multiple of 128 (or the full HW), rows a multiple of row_unit (or full R).
    target_block_bytes = 4 << 20
    lane_cap = max(128, (target_block_bytes // (row_unit * itemsize) // 128) * 128)
    t_lane = HW if HW <= lane_cap else lane_cap

    row_cap = max(row_unit,
                  (target_block_bytes // (t_lane * itemsize) // row_unit) * row_unit)
    if row_cap >= R:
        # Whole row range fits in one block; still try to split into >=2 row
        # blocks so v7x's two TensorCores both stream (no-op on v5e/v6e).
        t_row = R
        half = _round_up(pl.cdiv(R, 2), row_unit)
        if half < R:
            t_row = half
    else:
        t_row = row_cap  # multiple of row_unit by construction

    grid = (pl.cdiv(R, t_row), pl.cdiv(HW, t_lane))  # lane axis innermost

    # VMEM budget: 2 buffers x (x block + out block) + 2 x lane-padded bias
    # block (a (t_row, 1) block occupies t_row x 128 lanes in VMEM) + margin.
    x_block_bytes = t_row * t_lane * itemsize
    bias_block_bytes = _round_up(t_row, row_unit) * 128 * itemsize
    vmem_limit = 2 * (2 * x_block_bytes) + 2 * bias_block_bytes + (1 << 20)
    vmem_limit = int(min(max(vmem_limit, 4 << 20), 64 << 20))

    cost = pl.CostEstimate(
        flops=R * HW,
        transcendentals=0,
        bytes_accessed=2 * R * HW * itemsize + R * itemsize,
    )

    out = pl.pallas_call(
        learnable_bias_kernel,
        out_shape=jax.ShapeDtypeStruct((R, HW), dtype),
        grid=grid,
        in_specs=[
            pl.BlockSpec((t_row, t_lane), lambda r, s: (r, s)),
            pl.BlockSpec((t_row, 1), lambda r, s: (r, 0)),
        ],
        out_specs=pl.BlockSpec((t_row, t_lane), lambda r, s: (r, s)),
        compiler_params=pltpu.CompilerParams(
            dimension_semantics=("parallel", "parallel"),
            vmem_limit_bytes=vmem_limit,
        ),
        cost_estimate=cost,
    )(x2, b2)
    return out.reshape(B, C, H, W)


if __name__ == "__main__":
    B, C, H, W = 2, 4, 16, 16
    key = jax.random.PRNGKey(0)
    kx, kb = jax.random.split(key)
    x = jax.random.normal(kx, (B, C, H, W), jnp.float32)
    # The PyTorch parameter is initialized to zeros; use nonzero values here so
    # the test actually exercises the bias add.
    bias = 0.1 * jax.random.normal(kb, (1, C, 1, 1), jnp.float32)

    fwd = jax.jit(learnable_bias_forward)  # bias tiling fuses into the jit
    out = jax.block_until_ready(fwd(x, bias))
    ref = x + bias  # broadcast over (B, C, H, W)

    assert out.shape == (B, C, H, W), out.shape
    assert jnp.allclose(out, ref, atol=1e-6, rtol=1e-6), float(
        jnp.max(jnp.abs(out - ref)))
    print("KERNEL_OK")
</pallas_src>

<mosaic_0001>
module attributes {stable_mosaic.version = 11 : i64} {
  func.func @learnable_bias_kernel(%arg0: i32, %arg1: i32, %arg2: memref<8x256xf32, #tpu.memory_space<vmem>>, %arg3: memref<8x1xf32, #tpu.memory_space<vmem>>, %arg4: memref<8x256xf32, #tpu.memory_space<vmem>>) attributes {dimension_semantics = [#tpu.dimension_semantics<parallel>, #tpu.dimension_semantics<parallel>], iteration_bounds = array<i64: 1, 1>, scalar_prefetch = 0 : i64, scratch_operands = 0 : i64, tpu.core_type = #tpu.core_type<tc>, window_params = [{transform_indices = @transform_0, window_bounds = array<i64: 8, 256>}, {transform_indices = @transform_1, window_bounds = array<i64: 8, 1>}, {transform_indices = @transform_2, window_bounds = array<i64: 8, 256>}]} {
    %c0 = arith.constant 0 : index
    %c0_0 = arith.constant 0 : index
    %0 = vector.load %arg2[%c0, %c0_0] : memref<8x256xf32, #tpu.memory_space<vmem>>, vector<8x256xf32>
    %c0_1 = arith.constant 0 : index
    %c0_2 = arith.constant 0 : index
    %1 = vector.load %arg3[%c0_1, %c0_2] : memref<8x1xf32, #tpu.memory_space<vmem>>, vector<8x1xf32>
    %2 = vector.broadcast %1 : vector<8x1xf32> to vector<8x256xf32>
    %3 = arith.addf %0, %2 : vector<8x256xf32>
    %c0_3 = arith.constant 0 : index
    %c0_4 = arith.constant 0 : index
    %4 = vector.load %arg4[%c0_3, %c0_4] : memref<8x256xf32, #tpu.memory_space<vmem>>, vector<8x256xf32>
    tpu.vector_store %arg4[%c0_3, %c0_4], %3 {strides = array<i32>} : memref<8x256xf32, #tpu.memory_space<vmem>>, vector<8x256xf32>,
    return
  }
  func.func @transform_0(%arg0: i32, %arg1: i32) -> (i32, i32) {
    %c0_i32 = arith.constant 0 : i32
    return %arg0, %arg1 : i32, i32
  }
  func.func @transform_1(%arg0: i32, %arg1: i32) -> (i32, i32) {
    %c0_i32 = arith.constant 0 : i32
    %c0_i32_0 = arith.constant 0 : i32
    return %arg0, %c0_i32 : i32, i32
  }
  func.func @transform_2(%arg0: i32, %arg1: i32) -> (i32, i32) {
    %c0_i32 = arith.constant 0 : i32
    return %arg0, %arg1 : i32, i32
  }
}

</mosaic_0001>

<bundles_post_ra>
// kernel: learnable_bias_forward.1
= control target key start
LH: loop header
LB: loop body
LE: loop exit
PB: predicated region body
PF: predicated region fallthrough
CT: control target
= control target key end

     0   :  { %v29_v0 = vmov 0   ;;  %s60_s1 = inlined_call_operand.vmem [shape: f32[8,1], index: 1, kind: input, shape index: {}]   ;;  %s61_s0 = inlined_call_operand.vmem [shape: f32[8,256], index: 0, kind: input, shape index: {}]   ;;  %s62_s2 = inlined_call_operand.vmem [shape: f32[8,256], index: 2, kind: output, shape index: {}]  }
   0x1   :  { %28 = vset.pattern.permute.xlu0 %v29_v0  ;;  %v13_v1 = vld [vmem:[%s60_s1] sm:$0xff]  ;;  %v12_v3 = vld [vmem:[%s61_s0 + $0x8] sm:$0xff] }
   0x2   :  { %16 = vperm.xlu0 %28, %v13_v1   ;;  %v11_v2 = vld [vmem:[%s61_s0] sm:$0xff] }
  0x74   :  { %v17_v4 = vpop.permute.xlu0 %16 }
  0x75   :  { %v19_v5 = vadd.f32 %v17_v4, %v11_v2  ;;  %v20_v6 = vadd.f32 %v17_v4, %v12_v3 }
  0x77   :  { %21 = vst [vmem:[%s62_s2] sm:$0xff] %v19_v5 }
  0x78   :  { %22 = vst [vmem:[%s62_s2 + $0x8] sm:$0xff] %v20_v6 }

</bundles_post_ra>
